<compile_context>
chip_gen: v7x
topology: tpu7x:2x2x1
jax: 0.10.0
libtpu: 0.0.40
codegen_flags: <defaults>
</compile_context>

<pallas_src>
import functools

import jax
import jax.numpy as jnp
from jax import lax
from jax.experimental import pallas as pl
from jax.experimental.pallas import tpu as pltpu


# ----------------------------------------------------------------------------
# Kernel: one row-tile of (B*C) instance-channels, full H*W per row in VMEM.
# ----------------------------------------------------------------------------
def _adain_kernel(x_ref, w_ref, b_ref, o_ref, *, eps, inv_hw):
    # x_ref: (TR, HW) f32   w_ref/b_ref: (TR, 1) f32   o_ref: (TR, HW) f32
    x = x_ref[...]
    mean = jnp.sum(x, axis=1, keepdims=True) * inv_hw          # XLU reduce
    xc = x - mean
    var = jnp.sum(xc * xc, axis=1, keepdims=True) * inv_hw      # biased var
    inv_std = lax.rsqrt(var + eps)                              # EUP
    scale = inv_std * w_ref[...]                                 # (TR, 1)
    o_ref[...] = xc * scale + b_ref[...]


def _pick_row_tile(rows, hw, bytes_budget=8 << 20):
    """Largest multiple-of-8 divisor of `rows` whose f32 tile fits the budget."""
    if rows % 8 != 0:
        return rows  # block == full array dim is always a legal block shape
    tr = 8
    for cand in range(8, rows + 1, 8):
        if rows % cand == 0 and cand * hw * 4 <= bytes_budget:
            tr = cand
    return tr


def adaptive_instance_norm_2d(x, weight, bias, eps=1e-5):
    """x: (B, C, H, W) float; weight/bias: (B*C,) AdaIN-assigned affine."""
    B, C, H, W = x.shape
    R, HW = B * C, H * W

    x2 = x.astype(jnp.float32).reshape(R, HW)          # contiguous flatten: no copy
    w2 = weight.astype(jnp.float32).reshape(R, 1)
    b2 = bias.astype(jnp.float32).reshape(R, 1)

    TR = _pick_row_tile(R, HW)
    grid = (R // TR,)

    # Explicit VMEM budget: double-buffered input + output tiles + margin.
    tile_bytes = TR * HW * 4
    vmem_limit = int(2 * 2 * tile_bytes + (4 << 20))

    kernel = functools.partial(_adain_kernel, eps=float(eps), inv_hw=1.0 / HW)

    out2 = pl.pallas_call(
        kernel,
        out_shape=jax.ShapeDtypeStruct((R, HW), jnp.float32),
        grid=grid,
        in_specs=[
            pl.BlockSpec((TR, HW), lambda i: (i, 0)),
            pl.BlockSpec((TR, 1), lambda i: (i, 0)),
            pl.BlockSpec((TR, 1), lambda i: (i, 0)),
        ],
        out_specs=pl.BlockSpec((TR, HW), lambda i: (i, 0)),
        compiler_params=pltpu.CompilerParams(
            dimension_semantics=("parallel",),
            vmem_limit_bytes=vmem_limit,
        ),
    )(x2, w2, b2)

    return out2.reshape(B, C, H, W)


if __name__ == "__main__":
    key = jax.random.PRNGKey(0)
    xk, wk, bk = jax.random.split(key, 3)

    # Small shapes consistent with the module: batch=2, channels=4, spatial=16.
    B, C, H, W = 2, 4, 16, 16
    x = jax.random.normal(xk, (B, C, H, W), dtype=jnp.float32) * 2.0 + 0.5
    # AdaIN-assigned per-(batch, channel) affine params, shape (B*C,).
    weight = jax.random.normal(wk, (B * C,), dtype=jnp.float32) + 1.0
    bias = jax.random.normal(bk, (B * C,), dtype=jnp.float32) * 0.1

    out = jax.jit(adaptive_instance_norm_2d)(x, weight, bias)
    out = jax.block_until_ready(out)

    # Pure-JAX reference (instance norm over H*W with per-(b,c) affine).
    xr = x.reshape(B * C, H * W)
    mean = xr.mean(axis=1, keepdims=True)
    var = ((xr - mean) ** 2).mean(axis=1, keepdims=True)
    ref = ((xr - mean) / jnp.sqrt(var + 1e-5)) * weight[:, None] + bias[:, None]
    ref = ref.reshape(B, C, H, W)

    assert out.shape == (B, C, H, W), out.shape
    assert out.dtype == jnp.float32
    assert bool(jnp.all(jnp.isfinite(out)))
    assert bool(jnp.allclose(out, ref, atol=1e-4, rtol=1e-4)), (
        float(jnp.max(jnp.abs(out - ref)))
    )
    print("KERNEL_OK")
</pallas_src>

<mosaic_0001>
module attributes {stable_mosaic.version = 11 : i64} {
  func.func @_adain_kernel(%arg0: i32, %arg1: memref<8x256xf32, #tpu.memory_space<vmem>>, %arg2: memref<8x1xf32, #tpu.memory_space<vmem>>, %arg3: memref<8x1xf32, #tpu.memory_space<vmem>>, %arg4: memref<8x256xf32, #tpu.memory_space<vmem>>) attributes {dimension_semantics = [#tpu.dimension_semantics<parallel>], iteration_bounds = array<i64: 1>, scalar_prefetch = 0 : i64, scratch_operands = 0 : i64, tpu.core_type = #tpu.core_type<tc>, window_params = [{transform_indices = @transform_0, window_bounds = array<i64: 8, 256>}, {transform_indices = @transform_1, window_bounds = array<i64: 8, 1>}, {transform_indices = @transform_2, window_bounds = array<i64: 8, 1>}, {transform_indices = @transform_3, window_bounds = array<i64: 8, 256>}]} {
    %c0 = arith.constant 0 : index
    %c0_0 = arith.constant 0 : index
    %0 = vector.load %arg1[%c0, %c0_0] : memref<8x256xf32, #tpu.memory_space<vmem>>, vector<8x256xf32>
    %cst = arith.constant dense<0.000000e+00> : vector<8xf32>
    %1 = vector.multi_reduction <add>, %0, %cst [1] : vector<8x256xf32> to vector<8xf32>
    %2 = vector.shape_cast %1 : vector<8xf32> to vector<8x1xf32>
    %cst_1 = arith.constant 3.906250e-03 : f32
    %3 = vector.broadcast %cst_1 : f32 to vector<8x1xf32>
    %4 = arith.mulf %2, %3 : vector<8x1xf32>
    %5 = vector.broadcast %4 : vector<8x1xf32> to vector<8x256xf32>
    %6 = arith.subf %0, %5 : vector<8x256xf32>
    %7 = arith.mulf %6, %6 : vector<8x256xf32>
    %cst_2 = arith.constant dense<0.000000e+00> : vector<8xf32>
    %8 = vector.multi_reduction <add>, %7, %cst_2 [1] : vector<8x256xf32> to vector<8xf32>
    %9 = vector.shape_cast %8 : vector<8xf32> to vector<8x1xf32>
    %cst_3 = arith.constant 3.906250e-03 : f32
    %10 = vector.broadcast %cst_3 : f32 to vector<8x1xf32>
    %11 = arith.mulf %9, %10 : vector<8x1xf32>
    %cst_4 = arith.constant 9.99999974E-6 : f32
    %12 = vector.broadcast %cst_4 : f32 to vector<8x1xf32>
    %13 = arith.addf %11, %12 : vector<8x1xf32>
    %14 = math.rsqrt %13 : vector<8x1xf32>
    %c0_5 = arith.constant 0 : index
    %c0_6 = arith.constant 0 : index
    %15 = vector.load %arg2[%c0_5, %c0_6] : memref<8x1xf32, #tpu.memory_space<vmem>>, vector<8x1xf32>
    %16 = arith.mulf %14, %15 : vector<8x1xf32>
    %17 = vector.broadcast %16 : vector<8x1xf32> to vector<8x256xf32>
    %18 = arith.mulf %6, %17 : vector<8x256xf32>
    %c0_7 = arith.constant 0 : index
    %c0_8 = arith.constant 0 : index
    %19 = vector.load %arg3[%c0_7, %c0_8] : memref<8x1xf32, #tpu.memory_space<vmem>>, vector<8x1xf32>
    %20 = vector.broadcast %19 : vector<8x1xf32> to vector<8x256xf32>
    %21 = arith.addf %18, %20 : vector<8x256xf32>
    %c0_9 = arith.constant 0 : index
    %c0_10 = arith.constant 0 : index
    %22 = vector.load %arg4[%c0_9, %c0_10] : memref<8x256xf32, #tpu.memory_space<vmem>>, vector<8x256xf32>
    tpu.vector_store %arg4[%c0_9, %c0_10], %21 {strides = array<i32>} : memref<8x256xf32, #tpu.memory_space<vmem>>, vector<8x256xf32>,
    return
  }
  func.func @transform_0(%arg0: i32) -> (i32, i32) {
    %c0_i32 = arith.constant 0 : i32
    %c0_i32_0 = arith.constant 0 : i32
    return %arg0, %c0_i32 : i32, i32
  }
  func.func @transform_1(%arg0: i32) -> (i32, i32) {
    %c0_i32 = arith.constant 0 : i32
    %c0_i32_0 = arith.constant 0 : i32
    return %arg0, %c0_i32 : i32, i32
  }
  func.func @transform_2(%arg0: i32) -> (i32, i32) {
    %c0_i32 = arith.constant 0 : i32
    %c0_i32_0 = arith.constant 0 : i32
    return %arg0, %c0_i32 : i32, i32
  }
  func.func @transform_3(%arg0: i32) -> (i32, i32) {
    %c0_i32 = arith.constant 0 : i32
    %c0_i32_0 = arith.constant 0 : i32
    return %arg0, %c0_i32 : i32, i32
  }
}

</mosaic_0001>

<bundles_post_ra>
// kernel: adaptive_instance_norm_2d.1
= control target key start
LH: loop header
LB: loop body
LE: loop exit
PB: predicated region body
PF: predicated region fallthrough
CT: control target
= control target key end

     0   :  { %v58_v10 = vmov 0   ;;  %s97_s0 = inlined_call_operand.vmem [shape: f32[8,256], index: 0, kind: input, shape index: {}]   ;;  %s98_s1 = inlined_call_operand.vmem [shape: f32[8,1], index: 1, kind: input, shape index: {}]   ;;  %s99_s2 = inlined_call_operand.vmem [shape: f32[8,1], index: 2, kind: input, shape index: {}]   ;;  %s100_s3 = inlined_call_operand.vmem [shape: f32[8,256], index: 3, kind: output, shape index: {}]  }
   0x1   :  { %v14_v0 = vld [vmem:[%s97_s0] sm:$0xff]  ;;  %v15_v1 = vld [vmem:[%s97_s0 + $0x8] sm:$0xff]  ;;  %54 = vset.pattern.permute.xlu1 %v58_v10  ;;  %55 = vset.pattern.permute.xlu0 %v58_v10 }
   0x2   :  { %v16_v2 = vadd.f32 %v15_v1, %v14_v0  ;;  %v30_v14 = vld [vmem:[%s98_s1] sm:$0xff] }
   0x3   :  { %v39_v17 = vld [vmem:[%s99_s2] sm:$0xff] }
   0x4   :  { %17 = vadd.xlane.f32.xlu0 %v16_v2 }
  0x91   :  { %v18_v3 = vpop.xlane.xlu0 %17 }
  0x92   :  { %v19_v4 = vmul.f32 0.00390625, %v18_v3 }
  0x94   :  { %v20_v5 = vsub.f32 %v14_v0, %v19_v4  ;;  %v21_v6 = vsub.f32 %v15_v1, %v19_v4 }
  0x96   :  { %v22_v7 = vmul.f32 %v20_v5, %v20_v5  ;;  %v23_v8 = vmul.f32 %v21_v6, %v21_v6 }
  0x98   :  { %v24_v9 = vadd.f32 %v23_v8, %v22_v7 }
  0x9a   :  { %25 = vadd.xlane.f32.xlu0 %v24_v9 }
 0x127   :  { %v26_v11 = vpop.xlane.xlu0 %25 }
 0x128   :  { %v27_v12 = vmul.f32 0.00390625, %v26_v11 }
 0x12a   :  { %v28_v13 = vadd.f32 1e-05, %v27_v12 }
 0x12c   :  { %56 = vrsqrt.f32 %v28_v13 }
 0x136   :  { %v57_v15 = vpop.eup %56 }
 0x137   :  { %v31_v16 = vmul.f32 %v57_v15, %v30_v14 }
 0x139   :  { %34 = vperm.xlu1 %54, %v31_v16  }
 0x13d   :  { %42 = vperm.xlu1 %54, %v39_v17  }
 0x1b8   :  { %v35_v18 = vpop.permute.xlu1 %34 }
 0x1b9   :  { %v37_v19 = vmul.f32 %v35_v18, %v20_v5  ;;  %v38_v20 = vmul.f32 %v35_v18, %v21_v6 }
 0x1bc   :  { %v43_v21 = vpop.permute.xlu1 %42 }
 0x1bd   :  { %v45_v22 = vadd.f32 %v43_v21, %v37_v19  ;;  %v46_v23 = vadd.f32 %v43_v21, %v38_v20 }
 0x1bf   :  { %47 = vst [vmem:[%s100_s3] sm:$0xff] %v45_v22  ;;  %48 = vst [vmem:[%s100_s3 + $0x8] sm:$0xff] %v46_v23 }

</bundles_post_ra>
